<compile_context>
chip_gen: v6e
topology: v6e:2x2x1
jax: 0.10.0
libtpu: 0.0.40
codegen_flags: <defaults>
</compile_context>

<pallas_src>
import functools

import jax
import jax.numpy as jnp
from jax.experimental import pallas as pl
from jax.experimental.pallas import tpu as pltpu


# --------------------------------------------------------------------------- #
# helpers                                                                      #
# --------------------------------------------------------------------------- #
def _fit_tile(n, pref):
    """Largest power-of-two tile <= pref that divides n (fallback: n itself, i.e. the
    block covers the full extent, which is always legal)."""
    t = min(pref, n)
    while t > 8 and n % t:
        t //= 2
    if n % t or t % 8:
        t = n
    return t


# --------------------------------------------------------------------------- #
# Row-tiled projection matmul:  (M, K) @ (K, N) -> (M, N)                      #
# (K and N here are the embed dims, small enough to keep the weight fully      #
#  VMEM-resident; only the row/token dim is gridded.)                          #
# --------------------------------------------------------------------------- #
def _proj_kernel(x_ref, w_ref, o_ref):
    o_ref[...] = jnp.dot(
        x_ref[...].astype(jnp.bfloat16), w_ref[...],
        preferred_element_type=jnp.float32).astype(o_ref.dtype)


def _tiled_matmul(x2d, w, out_dtype, *, tm_pref=256):
    M, K = x2d.shape
    _, N = w.shape
    tm = _fit_tile(M, tm_pref)
    return pl.pallas_call(
        _proj_kernel,
        out_shape=jax.ShapeDtypeStruct((M, N), out_dtype),
        grid_spec=pltpu.PrefetchScalarGridSpec(
            num_scalar_prefetch=0,
            grid=(M // tm,),
            in_specs=[pl.BlockSpec((tm, K), lambda i: (i, 0)),
                      pl.BlockSpec((K, N), lambda i: (0, 0))],   # weight stays resident
            out_specs=pl.BlockSpec((tm, N), lambda i: (i, 0))),
        compiler_params=pltpu.CompilerParams(
            dimension_semantics=("parallel",)),
    )(x2d, w)


# --------------------------------------------------------------------------- #
# Flash attention: grid (B*H, q-tiles, kv-tiles), online softmax in scratch    #
# --------------------------------------------------------------------------- #
def _flash_kernel(q_ref, k_ref, v_ref, o_ref, m_sc, l_sc, acc_sc, *,
                  tq, tk, is_causal):
    qi = pl.program_id(1)
    ki = pl.program_id(2)

    @pl.when(ki == 0)
    def _init():
        m_sc[...] = jnp.full_like(m_sc, -1e30)
        l_sc[...] = jnp.zeros_like(l_sc)
        acc_sc[...] = jnp.zeros_like(acc_sc)

    def _compute():
        # QK^T: contract the head dim directly (no explicit K transpose / XLU copy).
        s = jax.lax.dot_general(
            q_ref[0], k_ref[0], (((1,), (1,)), ((), ())),
            preferred_element_type=jnp.float32)                      # (tq, tk) f32
        if is_causal:
            row = qi * tq + jax.lax.broadcasted_iota(jnp.int32, (tq, tk), 0)
            col = ki * tk + jax.lax.broadcasted_iota(jnp.int32, (tq, tk), 1)
            s = jnp.where(row >= col, s, -1e30)
        m_prev = m_sc[...]                                           # (tq, 1)
        m_new = jnp.maximum(m_prev, jnp.max(s, axis=-1, keepdims=True))
        alpha = jnp.exp(m_prev - m_new)
        p = jnp.exp(s - m_new)                                       # (tq, tk) f32
        l_sc[...] = alpha * l_sc[...] + jnp.sum(p, axis=-1, keepdims=True)
        acc_sc[...] = alpha * acc_sc[...] + jnp.dot(
            p.astype(jnp.bfloat16), v_ref[0], preferred_element_type=jnp.float32)
        m_sc[...] = m_new

    if is_causal:
        # Skip kv tiles lying entirely above the diagonal (fully masked).
        pl.when(ki * tk < (qi + 1) * tq)(_compute)
    else:
        _compute()

    @pl.when(ki == pl.num_programs(2) - 1)
    def _finalize():
        o_ref[0] = (acc_sc[...] * pl.reciprocal(l_sc[...], approx=False)
                    ).astype(o_ref.dtype)


def _flash_attention(q, k, v, *, is_causal, tile_pref=256):
    """q, k, v: (B*H, L, dh) bf16 -> ctx: (B*H, L, dh) bf16."""
    BH, L, dh = q.shape
    tq = _fit_tile(L, tile_pref)
    tk = _fit_tile(L, tile_pref)
    kern = functools.partial(_flash_kernel, tq=tq, tk=tk, is_causal=is_causal)
    return pl.pallas_call(
        kern,
        out_shape=jax.ShapeDtypeStruct((BH, L, dh), jnp.bfloat16),
        grid_spec=pltpu.PrefetchScalarGridSpec(
            num_scalar_prefetch=0,
            grid=(BH, L // tq, L // tk),
            in_specs=[pl.BlockSpec((1, tq, dh), lambda b, i, j: (b, i, 0)),
                      pl.BlockSpec((1, tk, dh), lambda b, i, j: (b, j, 0)),
                      pl.BlockSpec((1, tk, dh), lambda b, i, j: (b, j, 0))],
            out_specs=pl.BlockSpec((1, tq, dh), lambda b, i, j: (b, i, 0)),
            scratch_shapes=[pltpu.VMEM((tq, 1), jnp.float32),     # m: running max
                            pltpu.VMEM((tq, 1), jnp.float32),     # l: running denom
                            pltpu.VMEM((tq, dh), jnp.float32)]),  # acc: unnormalized ctx
        compiler_params=pltpu.CompilerParams(
            dimension_semantics=("parallel", "parallel", "arbitrary"),
            vmem_limit_bytes=32 * 1024 * 1024),   # fits v7x's 64 MiB VMEM with headroom
    )(q, k, v)


# --------------------------------------------------------------------------- #
# Module-level wrappers                                                        #
# --------------------------------------------------------------------------- #
def prepare_weights(w_qkv, w_proj, *, num_heads):
    """One-time weight prep: fold 1/sqrt(head_dim) into the Q columns of the fused QKV
    weight (removes a per-call full-tensor multiply) and store weights in bf16."""
    E = w_proj.shape[0]
    dh = E // num_heads
    w_qkv = w_qkv.at[:, :E].multiply(1.0 / float(dh) ** 0.5)
    return w_qkv.astype(jnp.bfloat16), w_proj.astype(jnp.bfloat16)


def causal_self_attention(x, w_qkv_b16, w_proj_b16, *, num_heads, is_causal=True):
    """x: (B, L, E) f32; w_qkv_b16: prepared (E, 3E) bf16 (= c_attn.weight^T, scale folded
    into Q columns); w_proj_b16: (E, E) bf16 (= c_proj.weight^T)."""
    B, L, E = x.shape
    H = num_heads
    dh = E // H

    # fused QKV projection — one MXU matmul over all heads, bf16 intermediate
    qkv = _tiled_matmul(x.reshape(B * L, E), w_qkv_b16, jnp.bfloat16)   # (B*L, 3E)

    # layout plumbing only (reshape/transpose, no compute): heads-leading (B*H, L, dh)
    qkv = qkv.reshape(B, L, 3, H, dh)
    q = qkv[:, :, 0].transpose(0, 2, 1, 3).reshape(B * H, L, dh)
    k = qkv[:, :, 1].transpose(0, 2, 1, 3).reshape(B * H, L, dh)
    v = qkv[:, :, 2].transpose(0, 2, 1, 3).reshape(B * H, L, dh)

    ctx = _flash_attention(q, k, v, is_causal=is_causal)                # (B*H, L, dh)

    # merge heads (== torch .transpose(1,2).contiguous().view(B, L, H*dh)), project out
    y = ctx.reshape(B, H, L, dh).transpose(0, 2, 1, 3).reshape(B * L, E)
    out = _tiled_matmul(y, w_proj_b16, jnp.float32)                     # (B*L, E) f32
    return out.reshape(B, L, E)


# --------------------------------------------------------------------------- #
# Pure-JAX reference (matches the torch module in training mode, dropout 0)    #
# --------------------------------------------------------------------------- #
def ref_forward(x, w_qkv, w_proj, *, num_heads, is_causal=True):
    B, L, E = x.shape
    dh = E // num_heads
    qkv = x @ w_qkv                                                     # (B, L, 3E)
    q, k, v = jnp.split(qkv, 3, axis=-1)
    q = q.reshape(B, L, num_heads, dh)
    k = k.reshape(B, L, num_heads, dh)
    v = v.reshape(B, L, num_heads, dh)
    s = jnp.einsum("blhd,bmhd->bhlm", q, k) / (dh ** 0.5)
    if is_causal:
        s = jnp.where(jnp.tril(jnp.ones((L, L), bool)), s, -jnp.inf)
    p = jax.nn.softmax(s, axis=-1)
    y = jnp.einsum("bhlm,bmhd->blhd", p, v).reshape(B, L, E)
    return y @ w_proj


if __name__ == "__main__":
    # small config consistent with the module: batch=2, seq=8, embed_dimension=32, heads=4
    B, L, E, H = 2, 8, 32, 4

    key = jax.random.PRNGKey(0)
    kx, k1, k2 = jax.random.split(key, 3)
    x = jax.random.normal(kx, (B, L, E), jnp.float32)
    w_qkv = 0.1 * jax.random.normal(k1, (E, 3 * E), jnp.float32)   # c_attn.weight^T
    w_proj = 0.1 * jax.random.normal(k2, (E, E), jnp.float32)      # c_proj.weight^T

    w_qkv_p, w_proj_p = prepare_weights(w_qkv, w_proj, num_heads=H)

    fwd = jax.jit(functools.partial(causal_self_attention, num_heads=H, is_causal=True))
    out = jax.block_until_ready(fwd(x, w_qkv_p, w_proj_p))

    with jax.default_matmul_precision("highest"):
        ref = jax.block_until_ready(
            ref_forward(x, w_qkv, w_proj, num_heads=H, is_causal=True))

    assert out.shape == (B, L, E)
    # bf16 MXU inputs / bf16 intermediates => looser tolerance than a pure-f32 path.
    if not jnp.allclose(out, ref, atol=4e-2, rtol=4e-2):
        raise AssertionError(
            f"kernel/ref mismatch, max err = {float(jnp.max(jnp.abs(out - ref)))}")
    print("KERNEL_OK")
</pallas_src>

<mosaic_0001>
module attributes {stable_mosaic.version = 11 : i64} {
  func.func @_proj_kernel(%arg0: i32, %arg1: memref<16x32xf32, #tpu.memory_space<vmem>>, %arg2: memref<32x96xbf16, #tpu.memory_space<vmem>>, %arg3: memref<16x96xbf16, #tpu.memory_space<vmem>>) attributes {dimension_semantics = [#tpu.dimension_semantics<parallel>], iteration_bounds = array<i64: 1>, scalar_prefetch = 0 : i64, scratch_operands = 0 : i64, tpu.core_type = #tpu.core_type<tc>, window_params = [{transform_indices = @transform_0, window_bounds = array<i64: 16, 32>}, {pipeline_mode = #tpu.pipeline_mode<synchronous>, transform_indices = @transform_1, window_bounds = array<i64: 32, 96>}, {transform_indices = @transform_2, window_bounds = array<i64: 16, 96>}]} {
    %c0 = arith.constant 0 : index
    %c0_0 = arith.constant 0 : index
    %0 = vector.load %arg1[%c0, %c0_0] : memref<16x32xf32, #tpu.memory_space<vmem>>, vector<16x32xf32>
    %1 = arith.truncf %0 : vector<16x32xf32> to vector<16x32xbf16>
    %c0_1 = arith.constant 0 : index
    %c0_2 = arith.constant 0 : index
    %2 = vector.load %arg2[%c0_1, %c0_2] : memref<32x96xbf16, #tpu.memory_space<vmem>>, vector<32x96xbf16>
    %cst = arith.constant dense<0.000000e+00> : vector<16x96xf32>
    %3 = tpu.matmul %1, %2, %cst {dimension_numbers = #tpu.dot_dimension_numbers<[1], [0], [0], [1], [0, 0, 1, 1], [], []>} : vector<16x32xbf16>, vector<32x96xbf16>, vector<16x96xf32> -> vector<16x96xf32>
    %4 = arith.truncf %3 : vector<16x96xf32> to vector<16x96xbf16>
    %c0_3 = arith.constant 0 : index
    %c0_4 = arith.constant 0 : index
    %5 = vector.load %arg3[%c0_3, %c0_4] : memref<16x96xbf16, #tpu.memory_space<vmem>>, vector<16x96xbf16>
    tpu.vector_store %arg3[%c0_3, %c0_4], %4 {strides = array<i32>} : memref<16x96xbf16, #tpu.memory_space<vmem>>, vector<16x96xbf16>,
    return
  }
  func.func @transform_0(%arg0: i32) -> (i32, i32) {
    %c0_i32 = arith.constant 0 : i32
    %c0_i32_0 = arith.constant 0 : i32
    return %arg0, %c0_i32 : i32, i32
  }
  func.func @transform_1(%arg0: i32) -> (i32, i32) {
    %c0_i32 = arith.constant 0 : i32
    %c0_i32_0 = arith.constant 0 : i32
    %c0_i32_1 = arith.constant 0 : i32
    return %c0_i32, %c0_i32_0 : i32, i32
  }
  func.func @transform_2(%arg0: i32) -> (i32, i32) {
    %c0_i32 = arith.constant 0 : i32
    %c0_i32_0 = arith.constant 0 : i32
    return %arg0, %c0_i32 : i32, i32
  }
}

module attributes {stable_mosaic.version = 11 : i64} {
  func.func @_flash_kernel(%arg0: i32, %arg1: i32, %arg2: i32, %arg3: memref<1x8x8xbf16, #tpu.memory_space<vmem>>, %arg4: memref<1x8x8xbf16, #tpu.memory_space<vmem>>, %arg5: memref<1x8x8xbf16, #tpu.memory_space<vmem>>, %arg6: memref<1x8x8xbf16, #tpu.memory_space<vmem>>, %arg7: memref<8x1xf32, #tpu.memory_space<vmem>>, %arg8: memref<8x1xf32, #tpu.memory_space<vmem>>, %arg9: memref<8x8xf32, #tpu.memory_space<vmem>>) attributes {dimension_semantics = [#tpu.dimension_semantics<parallel>, #tpu.dimension_semantics<parallel>, #tpu.dimension_semantics<arbitrary>], iteration_bounds = array<i64: 8, 1, 1>, scalar_prefetch = 0 : i64, scratch_operands = 3 : i64, tpu.core_type = #tpu.core_type<tc>, window_params = [{transform_indices = @transform_0, window_bounds = array<i64: 1, 8, 8>}, {transform_indices = @transform_1, window_bounds = array<i64: 1, 8, 8>}, {transform_indices = @transform_2, window_bounds = array<i64: 1, 8, 8>}, {transform_indices = @transform_3, window_bounds = array<i64: 1, 8, 8>}]} {
    %c0_i32 = arith.constant 0 : i32
    %0 = arith.cmpi eq, %arg2, %c0_i32 : i32
    %1 = arith.extui %0 : i1 to i32
    %c0_i32_0 = arith.constant 0 : i32
    %2 = arith.cmpi ne, %1, %c0_i32_0 : i32
    scf.if %2 {
      %cst = arith.constant -1.000000e+30 : f32
      %12 = vector.broadcast %cst : f32 to vector<8x1xf32>
      %c0 = arith.constant 0 : index
      %c0_5 = arith.constant 0 : index
      %13 = vector.load %arg7[%c0, %c0_5] : memref<8x1xf32, #tpu.memory_space<vmem>>, vector<8x1xf32>
      tpu.vector_store %arg7[%c0, %c0_5], %12 {strides = array<i32>} : memref<8x1xf32, #tpu.memory_space<vmem>>, vector<8x1xf32>,
      %cst_6 = arith.constant 0.000000e+00 : f32
      %14 = vector.broadcast %cst_6 : f32 to vector<8x1xf32>
      %c0_7 = arith.constant 0 : index
      %c0_8 = arith.constant 0 : index
      %15 = vector.load %arg8[%c0_7, %c0_8] : memref<8x1xf32, #tpu.memory_space<vmem>>, vector<8x1xf32>
      tpu.vector_store %arg8[%c0_7, %c0_8], %14 {strides = array<i32>} : memref<8x1xf32, #tpu.memory_space<vmem>>, vector<8x1xf32>,
      %cst_9 = arith.constant 0.000000e+00 : f32
      %16 = vector.broadcast %cst_9 : f32 to vector<8x8xf32>
      %c0_10 = arith.constant 0 : index
      %c0_11 = arith.constant 0 : index
      %17 = vector.load %arg9[%c0_10, %c0_11] : memref<8x8xf32, #tpu.memory_space<vmem>>, vector<8x8xf32>
      tpu.vector_store %arg9[%c0_10, %c0_11], %16 {strides = array<i32>} : memref<8x8xf32, #tpu.memory_space<vmem>>, vector<8x8xf32>,
    } else {
    }
    %c8_i32 = arith.constant 8 : i32
    %3 = arith.muli %arg2, %c8_i32 : i32
    %c1_i32 = arith.constant 1 : i32
    %4 = arith.addi %arg1, %c1_i32 : i32
    %c8_i32_1 = arith.constant 8 : i32
    %5 = arith.muli %4, %c8_i32_1 : i32
    %6 = arith.cmpi slt, %3, %5 : i32
    %7 = arith.extui %6 : i1 to i32
    %c0_i32_2 = arith.constant 0 : i32
    %8 = arith.cmpi ne, %7, %c0_i32_2 : i32
    scf.if %8 {
      %c0 = arith.constant 0 : index
      %c0_5 = arith.constant 0 : index
      %c0_6 = arith.constant 0 : index
      %12 = vector.load %arg3[%c0, %c0_5, %c0_6] : memref<1x8x8xbf16, #tpu.memory_space<vmem>>, vector<1x8x8xbf16>
      %13 = vector.shape_cast %12 : vector<1x8x8xbf16> to vector<8x8xbf16>
      %c0_7 = arith.constant 0 : index
      %c0_8 = arith.constant 0 : index
      %c0_9 = arith.constant 0 : index
      %14 = vector.load %arg4[%c0_7, %c0_8, %c0_9] : memref<1x8x8xbf16, #tpu.memory_space<vmem>>, vector<1x8x8xbf16>
      %15 = vector.shape_cast %14 : vector<1x8x8xbf16> to vector<8x8xbf16>
      %cst = arith.constant dense<0.000000e+00> : vector<8x8xf32>
      %16 = tpu.matmul %13, %15, %cst {dimension_numbers = #tpu.dot_dimension_numbers<[1], [1], [0], [0], [0, 0, 1, 0], [], []>} : vector<8x8xbf16>, vector<8x8xbf16>, vector<8x8xf32> -> vector<8x8xf32>
      %c8_i32_10 = arith.constant 8 : i32
      %17 = arith.muli %arg1, %c8_i32_10 : i32
      %18 = tpu.iota {dimensions = array<i32: 0>} : vector<8x8xi32>
      %19 = vector.broadcast %17 : i32 to vector<8x8xi32>
      %20 = arith.addi %19, %18 : vector<8x8xi32>
      %c8_i32_11 = arith.constant 8 : i32
      %21 = arith.muli %arg2, %c8_i32_11 : i32
      %22 = tpu.iota {dimensions = array<i32: 1>} : vector<8x8xi32>
      %23 = vector.broadcast %21 : i32 to vector<8x8xi32>
      %24 = arith.addi %23, %22 : vector<8x8xi32>
      %25 = arith.cmpi sge, %20, %24 : vector<8x8xi32>
      %cst_12 = arith.constant -1.000000e+30 : f32
      %26 = vector.broadcast %cst_12 : f32 to vector<8x8xf32>
      %27 = arith.select %25, %16, %26 : vector<8x8xi1>, vector<8x8xf32>
      %c0_13 = arith.constant 0 : index
      %c0_14 = arith.constant 0 : index
      %28 = vector.load %arg7[%c0_13, %c0_14] : memref<8x1xf32, #tpu.memory_space<vmem>>, vector<8x1xf32>
      %cst_15 = arith.constant dense<0xFF800000> : vector<8xf32>
      %29 = vector.multi_reduction <maximumf>, %27, %cst_15 [1] : vector<8x8xf32> to vector<8xf32>
      %30 = vector.shape_cast %29 : vector<8xf32> to vector<8x1xf32>
      %31 = arith.maximumf %28, %30 : vector<8x1xf32>
      %32 = arith.subf %28, %31 : vector<8x1xf32>
      %33 = math.exp %32 : vector<8x1xf32>
      %34 = vector.broadcast %31 : vector<8x1xf32> to vector<8x8xf32>
      %35 = arith.subf %27, %34 : vector<8x8xf32>
      %36 = math.exp %35 : vector<8x8xf32>
      %c0_16 = arith.constant 0 : index
      %c0_17 = arith.constant 0 : index
      %37 = vector.load %arg8[%c0_16, %c0_17] : memref<8x1xf32, #tpu.memory_space<vmem>>, vector<8x1xf32>
      %38 = arith.mulf %33, %37 : vector<8x1xf32>
      %cst_18 = arith.constant dense<0.000000e+00> : vector<8xf32>
      %39 = vector.multi_reduction <add>, %36, %cst_18 [1] : vector<8x8xf32> to vector<8xf32>
      %40 = vector.shape_cast %39 : vector<8xf32> to vector<8x1xf32>
      %41 = arith.addf %38, %40 : vector<8x1xf32>
      %c0_19 = arith.constant 0 : index
      %c0_20 = arith.constant 0 : index
      %42 = vector.load %arg8[%c0_19, %c0_20] : memref<8x1xf32, #tpu.memory_space<vmem>>, vector<8x1xf32>
      tpu.vector_store %arg8[%c0_19, %c0_20], %41 {strides = array<i32>} : memref<8x1xf32, #tpu.memory_space<vmem>>, vector<8x1xf32>,
      %c0_21 = arith.constant 0 : index
      %c0_22 = arith.constant 0 : index
      %43 = vector.load %arg9[%c0_21, %c0_22] : memref<8x8xf32, #tpu.memory_space<vmem>>, vector<8x8xf32>
      %44 = vector.broadcast %33 : vector<8x1xf32> to vector<8x8xf32>
      %45 = arith.mulf %44, %43 : vector<8x8xf32>
      %46 = arith.truncf %36 : vector<8x8xf32> to vector<8x8xbf16>
      %c0_23 = arith.constant 0 : index
      %c0_24 = arith.constant 0 : index
      %c0_25 = arith.constant 0 : index
      %47 = vector.load %arg5[%c0_23, %c0_24, %c0_25] : memref<1x8x8xbf16, #tpu.memory_space<vmem>>, vector<1x8x8xbf16>
      %48 = vector.shape_cast %47 : vector<1x8x8xbf16> to vector<8x8xbf16>
      %cst_26 = arith.constant dense<0.000000e+00> : vector<8x8xf32>
      %49 = tpu.matmul %46, %48, %cst_26 {dimension_numbers = #tpu.dot_dimension_numbers<[1], [0], [0], [1], [0, 0, 1, 1], [], []>} : vector<8x8xbf16>, vector<8x8xbf16>, vector<8x8xf32> -> vector<8x8xf32>
      %50 = arith.addf %45, %49 : vector<8x8xf32>
      %c0_27 = arith.constant 0 : index
      %c0_28 = arith.constant 0 : index
      %51 = vector.load %arg9[%c0_27, %c0_28] : memref<8x8xf32, #tpu.memory_space<vmem>>, vector<8x8xf32>
      tpu.vector_store %arg9[%c0_27, %c0_28], %50 {strides = array<i32>} : memref<8x8xf32, #tpu.memory_space<vmem>>, vector<8x8xf32>,
      %c0_29 = arith.constant 0 : index
      %c0_30 = arith.constant 0 : index
      %52 = vector.load %arg7[%c0_29, %c0_30] : memref<8x1xf32, #tpu.memory_space<vmem>>, vector<8x1xf32>
      tpu.vector_store %arg7[%c0_29, %c0_30], %31 {strides = array<i32>} : memref<8x1xf32, #tpu.memory_space<vmem>>, vector<8x1xf32>,
    } else {
    }
    %c0_i32_3 = arith.constant 0 : i32
    %9 = arith.cmpi eq, %arg2, %c0_i32_3 : i32
    %10 = arith.extui %9 : i1 to i32
    %c0_i32_4 = arith.constant 0 : i32
    %11 = arith.cmpi ne, %10, %c0_i32_4 : i32
    scf.if %11 {
      %c0 = arith.constant 0 : index
      %c0_5 = arith.constant 0 : index
      %12 = vector.load %arg9[%c0, %c0_5] : memref<8x8xf32, #tpu.memory_space<vmem>>, vector<8x8xf32>
      %c0_6 = arith.constant 0 : index
      %c0_7 = arith.constant 0 : index
      %13 = vector.load %arg8[%c0_6, %c0_7] : memref<8x1xf32, #tpu.memory_space<vmem>>, vector<8x1xf32>
      %14 = tpu.reciprocal %13 : vector<8x1xf32> -> vector<8x1xf32>
      %15 = vector.broadcast %14 : vector<8x1xf32> to vector<8x8xf32>
      %16 = arith.mulf %12, %15 : vector<8x8xf32>
      %17 = arith.truncf %16 : vector<8x8xf32> to vector<8x8xbf16>
      %c0_8 = arith.constant 0 : index
      %c0_9 = arith.constant 0 : index
      %c0_10 = arith.constant 0 : index
      %18 = vector.load %arg6[%c0_8, %c0_9, %c0_10] : memref<1x8x8xbf16, #tpu.memory_space<vmem>>, vector<1x8x8xbf16>
      %19 = vector.shape_cast %18 : vector<1x8x8xbf16> to vector<8x8xbf16>
      %20 = vector.shape_cast %17 : vector<8x8xbf16> to vector<1x8x8xbf16>
      tpu.vector_store %arg6[%c0_8, %c0_9, %c0_10], %20 {strides = array<i32>} : memref<1x8x8xbf16, #tpu.memory_space<vmem>>, vector<1x8x8xbf16>,
    } else {
    }
    return
  }
  func.func @transform_0(%arg0: i32, %arg1: i32, %arg2: i32) -> (i32, i32, i32) {
    %c0_i32 = arith.constant 0 : i32
    %c0_i32_0 = arith.constant 0 : i32
    return %arg0, %arg1, %c0_i32 : i32, i32, i32
  }
  func.func @transform_1(%arg0: i32, %arg1: i32, %arg2: i32) -> (i32, i32, i32) {
    %c0_i32 = arith.constant 0 : i32
    %c0_i32_0 = arith.constant 0 : i32
    return %arg0, %arg2, %c0_i32 : i32, i32, i32
  }
  func.func @transform_2(%arg0: i32, %arg1: i32, %arg2: i32) -> (i32, i32, i32) {
    %c0_i32 = arith.constant 0 : i32
    %c0_i32_0 = arith.constant 0 : i32
    return %arg0, %arg2, %c0_i32 : i32, i32, i32
  }
  func.func @transform_3(%arg0: i32, %arg1: i32, %arg2: i32) -> (i32, i32, i32) {
    %c0_i32 = arith.constant 0 : i32
    %c0_i32_0 = arith.constant 0 : i32
    return %arg0, %arg1, %c0_i32 : i32, i32, i32
  }
}

module attributes {stable_mosaic.version = 11 : i64} {
  func.func @_proj_kernel(%arg0: i32, %arg1: memref<16x32xbf16, #tpu.memory_space<vmem>>, %arg2: memref<32x32xbf16, #tpu.memory_space<vmem>>, %arg3: memref<16x32xf32, #tpu.memory_space<vmem>>) attributes {dimension_semantics = [#tpu.dimension_semantics<parallel>], iteration_bounds = array<i64: 1>, scalar_prefetch = 0 : i64, scratch_operands = 0 : i64, tpu.core_type = #tpu.core_type<tc>, window_params = [{transform_indices = @transform_0, window_bounds = array<i64: 16, 32>}, {pipeline_mode = #tpu.pipeline_mode<synchronous>, transform_indices = @transform_1, window_bounds = array<i64: 32, 32>}, {transform_indices = @transform_2, window_bounds = array<i64: 16, 32>}]} {
    %c0 = arith.constant 0 : index
    %c0_0 = arith.constant 0 : index
    %0 = vector.load %arg1[%c0, %c0_0] : memref<16x32xbf16, #tpu.memory_space<vmem>>, vector<16x32xbf16>
    %c0_1 = arith.constant 0 : index
    %c0_2 = arith.constant 0 : index
    %1 = vector.load %arg2[%c0_1, %c0_2] : memref<32x32xbf16, #tpu.memory_space<vmem>>, vector<32x32xbf16>
    %cst = arith.constant dense<0.000000e+00> : vector<16x32xf32>
    %2 = tpu.matmul %0, %1, %cst {dimension_numbers = #tpu.dot_dimension_numbers<[1], [0], [0], [1], [0, 0, 1, 1], [], []>} : vector<16x32xbf16>, vector<32x32xbf16>, vector<16x32xf32> -> vector<16x32xf32>
    %c0_3 = arith.constant 0 : index
    %c0_4 = arith.constant 0 : index
    %3 = vector.load %arg3[%c0_3, %c0_4] : memref<16x32xf32, #tpu.memory_space<vmem>>, vector<16x32xf32>
    tpu.vector_store %arg3[%c0_3, %c0_4], %2 {strides = array<i32>} : memref<16x32xf32, #tpu.memory_space<vmem>>, vector<16x32xf32>,
    return
  }
  func.func @transform_0(%arg0: i32) -> (i32, i32) {
    %c0_i32 = arith.constant 0 : i32
    %c0_i32_0 = arith.constant 0 : i32
    return %arg0, %c0_i32 : i32, i32
  }
  func.func @transform_1(%arg0: i32) -> (i32, i32) {
    %c0_i32 = arith.constant 0 : i32
    %c0_i32_0 = arith.constant 0 : i32
    %c0_i32_1 = arith.constant 0 : i32
    return %c0_i32, %c0_i32_0 : i32, i32
  }
  func.func @transform_2(%arg0: i32) -> (i32, i32) {
    %c0_i32 = arith.constant 0 : i32
    %c0_i32_0 = arith.constant 0 : i32
    return %arg0, %c0_i32 : i32, i32
  }
}

</mosaic_0001>

<bundles_post_ra>
// kernel: causal_self_attention.3
= control target key start
LH: loop header
LB: loop body
LE: loop exit
PB: predicated region body
PF: predicated region fallthrough
CT: control target
= control target key end

     0   :  { %7 = vsyncpa [#allocation3], 0  ;;  %s228_s0 = inlined_call_operand.hbm [shape: f32[16,32], index: 0, kind: input, shape index: {}]   ;;  %s229_s1 = inlined_call_operand.hbm [shape: bf16[32,96], index: 1, kind: input, shape index: {}]   ;;  %s230_s2 = inlined_call_operand.vmem [shape: bf16[16,96], index: 2, kind: output, shape index: {}]  }
   0x1   :  { %8 = vsyncpa [#allocation5], 0  ;;  %s193_s9 = smov [#allocation2]  }
   0x2   :  { %s14_s10 = sshll.u32 %s193_s9, 4  ;;  %s15_s10 = int_to_ptr.vmem [resolvable:$true] %s14_s10 }
   0x3   :  { %s157_s11 = scalar_lea.vmem %s15_s10, 256  ;;  %p162_p1 = scmp.lt.s32.totalorder %s15_s10, %s15_s10 }
   0x4   :  { %p158_p0 = scmp.ne.s32.totalorder %s15_s10, %s157_s11  ;;  %p163_p2 = scmp.lt.s32.totalorder %s157_s11, %s157_s11 }
   0x6   :  { %p164_p3 = por %p163_p2, %p162_p1 }
   0x8   :  { %p165_p4 = pnand %p164_p3, %p158_p0 }
   0xa   :  { %168 = shalt.err (!%p165_p4)
}
   0xb   :  { %s194_s12 = smov 128   ;;  %s195_s13 = smov 8  }
   0xc   :  { %20 = dma.hbm_to_vmem [thread:$0]  %s228_s0, 256, %s15_s10, [#allocation3], %s194_s12, %s194_s12, %s195_s13  }
   0xd   :  { %s196_s16 = smov [#allocation4]  }
   0xe   :  { %s26_s17 = sshll.u32 %s196_s16, 4  ;;  %s27_s17 = int_to_ptr.vmem [resolvable:$true] %s26_s17 }
   0xf   :  { %s177_s18 = scalar_lea.vmem %s27_s17, 256  ;;  %p182_p6 = scmp.lt.s32.totalorder %s27_s17, %s27_s17 }
  0x10   :  { %p178_p5 = scmp.ne.s32.totalorder %s27_s17, %s177_s18  ;;  %p183_p7 = scmp.lt.s32.totalorder %s177_s18, %s177_s18 }
  0x12   :  { %p184_p8 = por %p183_p7, %p182_p6 }
  0x14   :  { %p185_p9 = pnand %p184_p8, %p178_p5 }
  0x16   :  { %188 = shalt.err (!%p185_p9)
}
  0x17   :  { %s197_s19 = smov 64   ;;  %s198_s20 = smov 4  }
  0x18   :  { %32 = dma.hbm_to_vmem [thread:$0]  %s229_s1, 256, %s27_s17, [#allocation5], %s197_s19, %s197_s19, %s198_s20  }
  0x19   :  { %189 = dma.done.wait [#allocation3], 256  }
  0x1a   :  { %190 = vsyncadd [#allocation3], 4294967040 }
  0x1b   :  { %191 = dma.done.wait [#allocation5], 256  }
  0x1c   :  { %192 = vsyncadd [#allocation5], 4294967040  ;;  %v199_v0 = vmov 0.0   ;;  %vm200_vm0 = vmmov 0   ;;  %v147_v1 = vld [vmem:[#allocation4 + $0x8] sm:$0xff]   ;;  %v148_v2 = vld [vmem:[#allocation4] sm:$0xff]  }
  0x1d   :  { %131 = vmatprep.subr.bf16.mxu0 %v199_v0  ;;  %135 = vmatprep.mubr.msk.bf16.mxu0 %vm200_vm0, %v199_v0  ;;  %v40_v3 = vld [vmem:[#allocation2] sm:$0xff]  ;;  %v41_v4 = vld [vmem:[#allocation2 + $0x8] sm:$0xff]  ;;  %vm59_vm1 = vcmask 261120   ;;  %vm112_vm2 = vcmask 781312  }
  0x1e   :  { %132 = vmatpush3.bf16.msra.mxu0 %v147_v1  ;;  %v42_v5 = vpack.c.bf16 %v41_v4, %v40_v3 }
  0x1f   :  { %133 = vmatprep.subr.bf16.mxu0 %v199_v0 }
  0x22   :  { %134 = vmatpush3.bf16.msra.mxu0 %v148_v2 }
  0x25   :  { %136 = vmatmul.mubr.msk.bf16.vlgmr.msra.gmra.mxu0 %vm59_vm1, %v42_v5 }
  0xe5   :  { %v97_v6 = vpop.f32.mrf.mxu0 }
  0xe6   :  { %v126_v7 = vpack.c.bf16 %v97_v6, %v97_v6 }
  0xe7   :  { %v137_v8 = vpop.f32.mrf.mxu0 }
  0xe8   :  { %113 = vst.msk [vmem:[%s230_s2] sm:$0xf] %vm112_vm2, %v126_v7 }
  0xe9   :  { %v100_v9 = vpop.f32.mrf.mxu0 }
  0xea   :  { %v127_v10 = vpack.c.bf16 %v100_v9, %v100_v9 }
  0xeb   :  { %v138_v11 = vpop.f32.mrf.mxu0 }
  0xec   :  { %114 = vst.msk [vmem:[%s230_s2 + $0x4] sm:$0xf] %vm112_vm2, %v127_v10 }
  0xed   :  { %119 = vsyncpa [#allocation3], 1 }
  0xee   :  { %120 = vsyncpa [#allocation5], 1 }

// kernel: causal_self_attention.4
= control target key start
LH: loop header
LB: loop body
LE: loop exit
PB: predicated region body
PF: predicated region fallthrough
CT: control target
= control target key end

     0   :  { %s655_s12 = smov 0   ;;  %s657_s13 = smov 0   ;;  %s711_s0 = inlined_call_operand.vmem [shape: bf16[8,8,8], index: 0, kind: input, shape index: {}]   ;;  %s712_s1 = inlined_call_operand.vmem [shape: bf16[8,8,8], index: 1, kind: input, shape index: {}]   ;;  %s713_s2 = inlined_call_operand.vmem [shape: bf16[8,8,8], index: 2, kind: input, shape index: {}]   ;;  %s714_s3 = inlined_call_operand.vmem [shape: bf16[8,8,8], index: 3, kind: output, shape index: {}]  }
   0x1   :  { %s659_s14 = smov 0  }
   0x2 LB: > { %s32_s15 = sadd.s32 1, %s625_s13  ;;  %p546_p0 = scmp.ge.s32.totalorder %s629_s14, 1  ;;  %s629_s14 = sphi %s659_s14, %s13_s14   ;;  %s625_s13 = sphi %s657_s13, %s716_s13   ;;  %s621_s12 = sphi %s655_s12, %s715_s12  }
   0x3   : > { %p34_p1 = scmp.ge.s32.totalorder %s32_s15, 8  ;;  %p190_p2 = scmp.lt.s32.totalorder %s629_s14, 9 }
   0x5   : > { %s718_s15 = smov (%p34_p1, %s32_s15), 0  ;;  %p191_p3 = pnand %p546_p0, %p190_p2 }
   0x6   : > { %p232_p4 = scmp.lt.s32.totalorder (!%p191_p3), %s621_s12, 7 }
   0x7   : > { %194 = sbr.rel (%p191_p3) target bundleno = 793 (0x319), region = 32 }
   0xc   : > { %vm268_vm0 = vcmask 64512   ;;  %v631_v0 = vmov 0.0   ;;  %vm632_vm1 = vmmov 0   ;;  %s720_s12 = smov (!%p232_p4, %s621_s12), 7  ;;  %vm265_vm2 = vcmask 7168  }
   0xd   : > { %559 = vmatprep.subr.bf16.mxu0 %v631_v0  ;;  %269 = vst.msk [vmem:[#allocation4] sm:$0xff] %vm268_vm0, %v631_v0  ;;  %561 = vmatprep.mubr.msk.bf16.mxu0 %vm632_vm1, %v631_v0  ;;  %s674_s16 = sshll.u32 %s720_s12, 2  ;;  %v633_v4 = vmov -1e+30   ;;  %v327_v5 = vlaneseq  ;;  %v634_v14 = vmov 0   ;;  %vm373_vm4 = vcmask 1043456  }
   0xe   : > { %565 = vmatprep.subr.bf16.mxu1 %v631_v0  ;;  %567 = vmatprep.mubr.msk.bf16.mxu1 %vm632_vm1, %v631_v0  ;;  %s245_s19 = scalar_lea.vmem %s712_s1, %s674_s16  ;;  %s238_s22 = scalar_lea.vmem %s711_s0, %s674_s16  ;;  %266 = vst.msk [vmem:[#allocation2] sm:$0xff] %vm265_vm2, %v633_v4  ;;  %267 = vst.msk [vmem:[#allocation3] sm:$0xff] %vm265_vm2, %v631_v0  ;;  %vm433_vm5 = vcmask 60416  }
   0xf   : > { %v278_v1 = vld [vmem:[%s245_s19] sm:$0xf]  ;;  %v328_v6 = vshrl.u32 %v327_v5, 7  ;;  %v332_v7 = vand.u32 127, %v327_v5  ;;  %599 = vset.pattern.permute.xlu0 %v634_v14  ;;  %600 = vset.pattern.permute.xlu1 %v634_v14  ;;  %s252_s25 = scalar_lea.vmem %s713_s2, %s674_s16  ;;  %s259_s28 = scalar_lea.vmem %s714_s3, %s674_s16 }
  0x10   : > { %v284_v2 = vsel %vm268_vm0, %v278_v1, 0  ;;  %v277_v3 = vld [vmem:[%s238_s22] sm:$0xf] }
  0x11   : > { %560 = vmatpush3.bf16.xpose.msra.mxu0 %v284_v2  ;;  %vm335_vm3 = vcmp.ge.s32.totalorder %v328_v6, %v332_v7  ;;  %v369_v19 = vld [vmem:[%s252_s25] sm:$0xf] }
  0x12   : > { %v375_v20 = vsel %vm373_vm4, %v369_v19, 0 }
  0x13   : > { %566 = vmatpush3.bf16.msra.mxu1 %v375_v20 }
  0x14   : > { %v361_v35 = vld [vmem:[#allocation4] sm:$0xff] }
  0x15   : > { %v337_v15 = vld [vmem:[#allocation2] sm:$0xff]  ;;  %v353_v29 = vld [vmem:[#allocation3] sm:$0xff] }
  0x18   : > { %562 = vmatmul.mubr.msk.bf16.vlgmr.msra.gmra.mxu0 %vm268_vm0, %v277_v3 }
  0xd8   : > { %v320_v8 = vpop.f32.mrf.mxu0 }
  0xd9   : > { %v336_v9 = vsel %vm335_vm3, %v320_v8, -1e+30 }
  0xda   : > { %v563_v10 = vpop.f32.mrf.mxu0  ;;  %v338_v11 = vsel %vm268_vm0, %v336_v9, -inf }
  0xdb   : > { %339 = vmax.xlane.f32.xlu0 %v338_v11 }
  0xdc   : > { %v323_v12 = vpop.f32.mrf.mxu0 }
  0xde   : > { %v564_v13 = vpop.f32.mrf.mxu0 }
 0x164   : > { %v340_v16 = vpop.xlane.xlu0 %339 }
 0x165   : > { %v341_v17 = vmax.f32 %v337_v15, %v340_v16 }
 0x167   : > { %v342_v18 = vsub.f32 %v337_v15, %v341_v17  ;;  %419 = vst.msk [vmem:[#allocation2] sm:$0xff] %vm265_vm2, %v341_v17  ;;  %347 = vperm.xlu0 %599, %v341_v17  }
 0x169   : > { %v343_v25 = vmul.f32 1.442695, %v342_v18 }
 0x1e2   : > { %v348_v21 = vpop.permute.xlu0 %347 }
 0x1e3   : > { %v350_v22 = vsub.f32 %v336_v9, %v348_v21 }
 0x1e5   : > { %v351_v23 = vmul.f32 1.442695, %v350_v22 }
 0x1e7   : > { %601 = vpow2.f32 %v351_v23 }
 0x1e8   : > { %603 = vpow2.f32 %v343_v25 }
 0x1f4   : > { %v602_v24 = vpop.eup %601 }
 0x1f5   : > { %v355_v26 = vsel %vm268_vm0, %v602_v24, 0.0  ;;  %v368_v27 = vpack.c.bf16 %v602_v24, %v602_v24  ;;  %v604_v28 = vpop.eup %603 }
 0x1f6   : > { %356 = vadd.xlane.f32.xlu1 %v355_v26  ;;  %v354_v30 = vmul.f32 %v604_v28, %v353_v29 }
 0x1f7   : > { %568 = vmatmul.mubr.msk.bf16.vlgmr.msra.gmra.mxu1 %vm268_vm0, %v368_v27 }
 0x207   : > { %364 = vperm.xlu1 %600, %v604_v28  }
 0x27f   : > { %v357_v31 = vpop.xlane.xlu1 %356 }
 0x280   : > { %v358_v32 = vadd.f32 %v357_v31, %v354_v30 }
 0x282   : > { %360 = vst.msk [vmem:[#allocation3] sm:$0xff] %vm265_vm2, %v358_v32 }
 0x283   : > { %v365_v36 = vpop.permute.xlu1 %364 }
 0x284   : > { %v367_v37 = vmul.f32 %v365_v36, %v361_v35 }
 0x289   : > { %v424_v33 = vld [vmem:[#allocation3] sm:$0xff] }
 0x28a   : > { %605 = vrcp.f32 %v424_v33 }
 0x297   : > { %v606_v34 = vpop.eup %605 }
 0x298   : > { %428 = vperm.xlu1 %600, %v606_v34  }
 0x2b7   : > { %v411_v38 = vpop.f32.mrf.mxu1 }
 0x2b8   : > { %v417_v39 = vadd.f32 %v411_v38, %v367_v37 }
 0x2b9   : > { %v569_v40 = vpop.f32.mrf.mxu1 }
 0x2ba   : > { %418 = vst.msk [vmem:[#allocation4] sm:$0xff] %vm268_vm0, %v417_v39 }
 0x2bb   : > { %v414_v41 = vpop.f32.mrf.mxu1 }
 0x2bd   : > { %v570_v42 = vpop.f32.mrf.mxu1 }
 0x2c1   : > { %v423_v43 = vld [vmem:[#allocation4] sm:$0xff] }
 0x313   : > { %v429_v44 = vpop.permute.xlu1 %428 }
 0x314   : > { %v431_v45 = vmul.f32 %v429_v44, %v423_v43 }
 0x316   : > { %v432_v46 = vpack.c.bf16 %v431_v45, %v431_v45 }
 0x318   : > { %434 = vst.msk [vmem:[%s259_s28] sm:$0xf] %vm433_vm5, %v432_v46 }
 0x319 PF: > { %s13_s14 = sadd.s32 1, %s629_s14   ;;  %s715_s12 = smov %s625_s13 }
 0x31a   : > { %p10_p5 = scmp.ge.s32.totalorder %s13_s14, 10   ;;  %s716_s13 = smov %s718_s15 }
 0x31c   :  { %12 = sbr.rel (!%p10_p5) target bundleno = 2 (0x2), region = 80 }

// kernel: causal_self_attention.5
= control target key start
LH: loop header
LB: loop body
LE: loop exit
PB: predicated region body
PF: predicated region fallthrough
CT: control target
= control target key end

     0   :  { %v144_v1 = vmov 0.0   ;;  %vm145_vm0 = vmmov 0   ;;  %s176_s0 = inlined_call_operand.vmem [shape: bf16[16,32], index: 0, kind: input, shape index: {}]   ;;  %s177_s1 = inlined_call_operand.vmem [shape: bf16[32,32], index: 1, kind: input, shape index: {}]   ;;  %s178_s2 = inlined_call_operand.hbm [shape: f32[16,32], index: 2, kind: output, shape index: {}]  }
   0x1   :  { %v119_v0 = vld [vmem:[%s177_s1 + $0x8] sm:$0xff]   ;;  %106 = vmatprep.subr.bf16.mxu0 %v144_v1  ;;  %v120_v2 = vld [vmem:[%s177_s1] sm:$0xff]   ;;  %110 = vmatprep.mubr.msk.bf16.mxu0 %vm145_vm0, %v144_v1 }
   0x2   :  { %107 = vmatpush3.bf16.msra.mxu0 %v119_v0 }
   0x3   :  { %108 = vmatprep.subr.bf16.mxu0 %v144_v1 }
   0x4   :  { %7 = vsyncpa [#allocation3], 0  ;;  %v121_v3 = vld [vmem:[%s176_s0] sm:$0xff]   ;;  %vm36_vm1 = vcmask 261120   ;;  %s146_s15 = smov [#allocation2]  }
   0x5   :  { %s88_s16 = sshll.u32 %s146_s15, 4  ;;  %s89_s16 = int_to_ptr.vmem [resolvable:$true] %s88_s16 }
   0x6   :  { %109 = vmatpush3.bf16.msra.mxu0 %v120_v2  ;;  %s122_s1 = scalar_lea.vmem %s89_s16, 256  ;;  %p127_p1 = scmp.lt.s32.totalorder %s89_s16, %s89_s16 }
   0x7   :  { %p123_p0 = scmp.ne.s32.totalorder %s89_s16, %s122_s1  ;;  %p128_p2 = scmp.lt.s32.totalorder %s122_s1, %s122_s1 }
   0x9   :  { %111 = vmatmul.mubr.msk.bf16.vlgmr.msra.gmra.mxu0 %vm36_vm1, %v121_v3  ;;  %p129_p3 = por %p128_p2, %p127_p1 }
   0xb   :  { %p130_p4 = pnand %p129_p3, %p123_p0 }
  0xc9   :  { %v74_v4 = vpop.f32.mrf.mxu0 }
  0xca   :  { %81 = vst.msk [vmem:[#allocation2] sm:$0xff] %vm36_vm1, %v74_v4 }
  0xcb   :  { %v112_v5 = vpop.f32.mrf.mxu0 }
  0xcd   :  { %v77_v6 = vpop.f32.mrf.mxu0 }
  0xce   :  { %82 = vst.msk [vmem:[#allocation2 + $0x8] sm:$0xff] %vm36_vm1, %v77_v6 }
  0xcf   :  { %v113_v7 = vpop.f32.mrf.mxu0 }
  0xd0   :  { %133 = shalt.err (!%p130_p4)
}
  0xd1   :  { %s147_s0 = smov 128   ;;  %s148_s17 = smov 8  }
  0xd2   :  { %94 = dma.vmem_to_hbm [thread:$0]  %s89_s16, 256, %s178_s2, [#allocation3], %s147_s0, %s147_s0, %s148_s17  }
  0xd3   :  { %142 = dma.done.wait [#allocation3], 256  }
  0xd4   :  { %143 = vsyncadd [#allocation3], 4294967040 }
  0xd5   :  { %98 = vsyncpa [#allocation3], 1 }

</bundles_post_ra>
